<compile_context>
chip_gen: v7x
topology: tpu7x:2x2x1
jax: 0.10.0
libtpu: 0.0.40
codegen_flags: <defaults>
</compile_context>

<pallas_src>
import functools

import jax
import jax.numpy as jnp
from jax.experimental import pallas as pl
from jax.experimental.pallas import tpu as pltpu


def _prompt_kernel(off_ref, x_ref, patch_ref, o_ref, *, width):
    # off_ref: SMEM scalar-prefetch array [fi, fj].
    # Single flattened shift: element (r, c) of the top-left patch moves to
    # ((r+fi), (c+fj)) because c + fj < W (no row wrap) and r + fi < H.
    shift = off_ref[0] * width + off_ref[1]
    p = pltpu.roll(patch_ref[...], shift, axis=1)   # (C, H*W), rides the XLU slot
    o_ref[...] = x_ref[...] + p[None]               # broadcast over the batch tile


def random_patch_prompt(x, patch_param, offsets):
    """x: (B, C, H, W) f32; patch_param: (1, C, P, P); offsets: (2,) int32 [fi, fj]."""
    B, C, H, W = x.shape
    P = patch_param.shape[-1]
    nbytes = jnp.dtype(x.dtype).itemsize

    # Lane-dense flattened views (reshape of contiguous data is free in XLA).
    x_flat = x.reshape(B, C, H * W)
    padded = (
        jnp.zeros((C, H, W), x.dtype)
        .at[:, :P, :P]
        .set(patch_param[0].astype(x.dtype))
        .reshape(C, H * W)
    )

    # Pick a batch tile so each input block is ~2 MiB (amortizes per-step
    # overhead on v6e) while 2x double-buffered in+out blocks stay far below
    # the scoped VMEM limit on every chip (v5e 16 MiB default, v7x 64 MiB phys).
    bytes_per_img = C * H * W * nbytes
    target_block_bytes = 2 * 1024 * 1024
    tb = 1
    for cand in range(min(B, max(1, target_block_bytes // max(bytes_per_img, 1))), 0, -1):
        if B % cand == 0:
            tb = cand
            break

    cost = pl.CostEstimate(
        flops=B * C * H * W,                                   # one add per element
        transcendentals=0,
        bytes_accessed=(2 * B * C * H * W + C * H * W) * nbytes,
    )

    out_flat = pl.pallas_call(
        functools.partial(_prompt_kernel, width=W),
        out_shape=jax.ShapeDtypeStruct((B, C, H * W), x.dtype),
        grid_spec=pltpu.PrefetchScalarGridSpec(
            num_scalar_prefetch=1,
            grid=(B // tb,),
            in_specs=[
                pl.BlockSpec((tb, C, H * W), lambda b, off: (b, 0, 0)),
                # Constant block index -> the padded patch is DMA'd once and reused.
                pl.BlockSpec((C, H * W), lambda b, off: (0, 0)),
            ],
            out_specs=pl.BlockSpec((tb, C, H * W), lambda b, off: (b, 0, 0)),
        ),
        compiler_params=pltpu.CompilerParams(
            dimension_semantics=("parallel",),  # megacore-shard the batch axis (v7x)
        ),
        cost_estimate=cost,
    )(offsets, x_flat, padded)

    return out_flat.reshape(B, C, H, W)


if __name__ == "__main__":
    image_size = 16
    prompt_size = 4
    B, C = 2, 3  # the (1, 3, P, P) patch parameter forces 3 channels

    key = jax.random.PRNGKey(0)
    k_x, k_patch, k_off = jax.random.split(key, 3)

    # Inputs / deterministic "parameter" init (torch.randn equivalent).
    x = jax.random.normal(k_x, (B, C, image_size, image_size), dtype=jnp.float32)
    patch_param = jax.random.normal(
        k_patch, (1, C, prompt_size, prompt_size), dtype=jnp.float32)

    # np.random.randint(low=0, high=image_size - prompt_size) equivalent,
    # made deterministic with a JAX key (host RNG has no in-kernel analogue).
    offsets = jax.random.randint(
        k_off, (2,), 0, image_size - prompt_size, dtype=jnp.int32)

    out = random_patch_prompt(x, patch_param, offsets)
    out = jax.block_until_ready(out)

    # Pure-JAX reference of the PyTorch semantics.
    fi, fj = offsets[0], offsets[1]
    full = jnp.zeros_like(x)
    full = jax.lax.dynamic_update_slice(
        full,
        jnp.broadcast_to(patch_param, (B, C, prompt_size, prompt_size)),
        (jnp.int32(0), jnp.int32(0), fi, fj),
    )
    ref = x + full
    assert jnp.allclose(out, ref, atol=1e-6), "mismatch vs reference"

    print("KERNEL_OK")
</pallas_src>

<mosaic_0001>
module attributes {stable_mosaic.version = 11 : i64} {
  func.func @_prompt_kernel(%arg0: i32, %arg1: memref<2xi32, #tpu.memory_space<smem>>, %arg2: memref<2x3x256xf32, #tpu.memory_space<vmem>>, %arg3: memref<3x256xf32, #tpu.memory_space<vmem>>, %arg4: memref<2x3x256xf32, #tpu.memory_space<vmem>>) attributes {dimension_semantics = [#tpu.dimension_semantics<parallel>], iteration_bounds = array<i64: 1>, scalar_prefetch = 1 : i64, scratch_operands = 0 : i64, tpu.core_type = #tpu.core_type<tc>, window_params = [{transform_indices = @transform_0, window_bounds = array<i64: 2, 3, 256>}, {pipeline_mode = #tpu.pipeline_mode<synchronous>, transform_indices = @transform_1, window_bounds = array<i64: 3, 256>}, {transform_indices = @transform_2, window_bounds = array<i64: 2, 3, 256>}]} {
    %c0 = arith.constant 0 : index
    %0 = memref.load %arg1[%c0] : memref<2xi32, #tpu.memory_space<smem>>
    %c16_i32 = arith.constant 16 : i32
    %1 = arith.muli %0, %c16_i32 : i32
    %c1 = arith.constant 1 : index
    %2 = memref.load %arg1[%c1] : memref<2xi32, #tpu.memory_space<smem>>
    %3 = arith.addi %1, %2 : i32
    %c0_0 = arith.constant 0 : index
    %c0_1 = arith.constant 0 : index
    %4 = vector.load %arg3[%c0_0, %c0_1] : memref<3x256xf32, #tpu.memory_space<vmem>>, vector<3x256xf32>
    %5 = tpu.dynamic_rotate %4 by %3 dim 1 : vector<3x256xf32>, i32 -> vector<3x256xf32>
    %c0_2 = arith.constant 0 : index
    %c0_3 = arith.constant 0 : index
    %c0_4 = arith.constant 0 : index
    %6 = vector.load %arg2[%c0_2, %c0_3, %c0_4] : memref<2x3x256xf32, #tpu.memory_space<vmem>>, vector<2x3x256xf32>
    %7 = vector.shape_cast %5 : vector<3x256xf32> to vector<1x3x256xf32>
    %8 = vector.broadcast %7 : vector<1x3x256xf32> to vector<2x3x256xf32>
    %9 = arith.addf %6, %8 : vector<2x3x256xf32>
    %c0_5 = arith.constant 0 : index
    %c0_6 = arith.constant 0 : index
    %c0_7 = arith.constant 0 : index
    %10 = vector.load %arg4[%c0_5, %c0_6, %c0_7] : memref<2x3x256xf32, #tpu.memory_space<vmem>>, vector<2x3x256xf32>
    tpu.vector_store %arg4[%c0_5, %c0_6, %c0_7], %9 {strides = array<i32>} : memref<2x3x256xf32, #tpu.memory_space<vmem>>, vector<2x3x256xf32>,
    return
  }
  func.func @transform_0(%arg0: i32, %arg1: memref<2xi32, #tpu.memory_space<smem>>) -> (i32, i32, i32) {
    %c0_i32 = arith.constant 0 : i32
    %c0_i32_0 = arith.constant 0 : i32
    %c0_i32_1 = arith.constant 0 : i32
    return %arg0, %c0_i32, %c0_i32_0 : i32, i32, i32
  }
  func.func @transform_1(%arg0: i32, %arg1: memref<2xi32, #tpu.memory_space<smem>>) -> (i32, i32) {
    %c0_i32 = arith.constant 0 : i32
    %c0_i32_0 = arith.constant 0 : i32
    %c0_i32_1 = arith.constant 0 : i32
    return %c0_i32, %c0_i32_0 : i32, i32
  }
  func.func @transform_2(%arg0: i32, %arg1: memref<2xi32, #tpu.memory_space<smem>>) -> (i32, i32, i32) {
    %c0_i32 = arith.constant 0 : i32
    %c0_i32_0 = arith.constant 0 : i32
    %c0_i32_1 = arith.constant 0 : i32
    return %arg0, %c0_i32, %c0_i32_0 : i32, i32, i32
  }
}

</mosaic_0001>

<bundles_post_ra>
// kernel: tpu_custom_call.1
= control target key start
LH: loop header
LB: loop body
LE: loop exit
PB: predicated region body
PF: predicated region fallthrough
CT: control target
= control target key end

     0   :  { %s115_s0 = inlined_call_operand.vmem [shape: s32[2], index: 0, kind: input, shape index: {}]   ;;  %s116_s1 = inlined_call_operand.vmem [shape: f32[2,3,256], index: 1, kind: input, shape index: {}]   ;;  %s117_s2 = inlined_call_operand.vmem [shape: f32[3,256], index: 2, kind: input, shape index: {}]   ;;  %s118_s3 = inlined_call_operand.vmem [shape: f32[2,3,256], index: 3, kind: output, shape index: {}]  }
   0x1   :  { %s8_s14 = sshll.u32 %s115_s0, 4  ;;  %s9_s14 = int_to_ptr.vmem [resolvable:$true] %s8_s14 }
   0x2   :  { %s62_s15 = scalar_lea.vmem %s9_s14, 16  ;;  %p67_p1 = scmp.lt.s32.totalorder %s9_s14, %s9_s14 }
   0x3   :  { %p63_p0 = scmp.ne.s32.totalorder %s9_s14, %s62_s15  ;;  %p68_p2 = scmp.lt.s32.totalorder %s62_s15, %s62_s15 }
   0x5   :  { %p69_p3 = por %p68_p2, %p67_p1 }
   0x7   :  { %p70_p4 = pnand %p69_p3, %p63_p0 }
   0x9   :  { %73 = shalt.err (!%p70_p4)  }
   0xa   :  { %s76_s16 = smov [#allocation3]  }
   0xb   :  { %11 = dma.vmem_to_smem %s9_s14, 16, %s76_s16, [#allocation2] }
   0xc   :  { %74 = dma.done.wait [#allocation2], 16 }
   0xd   :  { %75 = vsyncadd [#allocation2], 4294967280 }
   0xe   :  { %13 = sfence }
   0xf   :  { %s18_s17 = sld [smem:[#allocation3]]  ;;  %s59_s18 = sld [smem:[#allocation3 + $0x1]]  ;;  %v22_v0 = vld [vmem:[%s117_s2] sm:$0x77]  ;;  %v34_v2 = vlaneseq  ;;  %v45_v11 = vld [vmem:[%s116_s1 + $0x8] sm:$0x77] }
  0x10   :  { %v24_v1 = vcombine.high %v22_v0, %v22_v0  ;;  %v44_v10 = vld [vmem:[%s116_s1] sm:$0x77] }
  0x11   :  { %v35_v3 = vand.u32 127, %v34_v2 }
  0x15   :  { %s58_s19 = sshll.u32 %s18_s17, 4 }
  0x16   :  { %s21_s20 = sadd.s32 %s59_s18, %s58_s19 }
  0x17   :  { %s26_s0 = sand.u32 255, %s21_s20  }
  0x18   :  { %s27_s23 = sand.u32 127, %s26_s0   ;;  %s28_s24 = sshrl.u32 %s26_s0, 7 }
  0x19   :  { %29 = vrot.lane.b32.xlu0 %v22_v0, %s27_s23  ;;  %s39_s25 = sand.u32 1, %s28_s24  ;;  %v33_v4 = vstv %s27_s23 }
  0x1a   :  { %v40_v5 = vstv %s39_s25  ;;  %vm36_vm0 = vcmp.lt.s32.totalorder %v35_v3, %v33_v4 }
  0x1b   :  { %vm41_vm1 = vcmp.ne.s32.totalorder %v40_v5, 0 }
  0x1d   :  { %31 = vrot.lane.b32.xlu0 %v24_v1, %s27_s23 }
  0x8b   :  { %v30_v6 = vpop.permute.xlu0 %29 }
  0x8f   :  { %v32_v7 = vpop.permute.xlu0 %31 }
  0x90   :  { %v37_v8 = vsel %vm36_vm0, %v30_v6, %v32_v7  ;;  %v38_v9 = vsel %vm36_vm0, %v32_v7, %v30_v6 }
  0x91   :  { %v42_v12 = vsel %vm41_vm1, %v37_v8, %v38_v9  ;;  %v43_v13 = vsel %vm41_vm1, %v38_v9, %v37_v8 }
  0x92   :  { %v48_v14 = vcombine.low %v42_v12, %v43_v13 }
  0x94   :  { %v50_v15 = vadd.f32 %v48_v14, %v44_v10  ;;  %v51_v16 = vadd.f32 %v48_v14, %v45_v11 }
  0x96   :  { %52 = vst [vmem:[%s118_s3] sm:$0x77] %v50_v15  ;;  %53 = vst [vmem:[%s118_s3 + $0x8] sm:$0x77] %v51_v16 }

</bundles_post_ra>
